<compile_context>
chip_gen: v6e
topology: v6e:2x2x1
jax: 0.10.0
libtpu: 0.0.40
codegen_flags: <defaults>
</compile_context>

<pallas_src>
import jax
import jax.numpy as jnp
from jax.experimental import pallas as pl
from jax.experimental.pallas import tpu as pltpu  # noqa: F401  (TPU backend)

EPS = 1e-5


def _bn_kernel(x_ref, gamma_ref, beta_ref, o_ref):
    # x_ref: (C, R) with C = channels on sublanes, R = N*H*W on lanes.
    x = x_ref[...]
    xf = x if x.dtype == jnp.float32 else x.astype(jnp.float32)
    r = xf.shape[1]

    # Per-channel batch statistics (biased variance), reduced over the lane axis.
    mean = jnp.sum(xf, axis=1, keepdims=True) / r                 # (C, 1)
    centered = xf - mean
    var = jnp.sum(centered * centered, axis=1, keepdims=True) / r  # (C, 1)

    # Fold normalization + affine into per-channel scale/shift (vreg-column work).
    inv = jax.lax.rsqrt(var + EPS)                                 # EUP
    scale = inv * gamma_ref[...]                                   # (C, 1)
    shift = beta_ref[...] - mean * scale                           # (C, 1)

    # Per-element: one mul + one add.
    o_ref[...] = (xf * scale + shift).astype(o_ref.dtype)


def batchnorm2d(x_nchw, gamma, beta):
    N, C, H, W = x_nchw.shape
    R = N * H * W

    if N == 1:
        # Free, contiguous view: NCHW with N=1 is already (C, H*W) row-major.
        x2d = x_nchw.reshape(C, R)
    else:
        # General case: channels first, rows = N*H*W on lanes.
        x2d = jnp.transpose(x_nchw, (1, 0, 2, 3)).reshape(C, R)

    gamma2d = gamma.reshape(C, 1).astype(jnp.float32)
    beta2d = beta.reshape(C, 1).astype(jnp.float32)

    out2d = pl.pallas_call(
        _bn_kernel,
        out_shape=jax.ShapeDtypeStruct((C, R), x_nchw.dtype),
        in_specs=[
            pl.BlockSpec((C, R), lambda: (0, 0)),
            pl.BlockSpec((C, 1), lambda: (0, 0)),
            pl.BlockSpec((C, 1), lambda: (0, 0)),
        ],
        out_specs=pl.BlockSpec((C, R), lambda: (0, 0)),
    )(x2d, gamma2d, beta2d)

    if N == 1:
        return out2d.reshape(N, C, H, W)  # free reshape back to NCHW
    return jnp.transpose(out2d.reshape(C, N, H, W), (1, 0, 2, 3))

    # TODO(synk): running_mean/running_var momentum update (training-mode state
    # side effect) is not part of the forward output and is not implemented.


if __name__ == "__main__":
    key = jax.random.PRNGKey(0)
    N, C, H, W = 1, 128, 7, 7
    x = jax.random.normal(key, (N, C, H, W), dtype=jnp.float32)

    # PyTorch BatchNorm2d default parameter init: weight=1, bias=0.
    gamma = jnp.ones((C,), dtype=jnp.float32)
    beta = jnp.zeros((C,), dtype=jnp.float32)

    out = batchnorm2d(x, gamma, beta)
    jax.block_until_ready(out)

    # Pure-JAX reference (training-mode batch stats, biased variance).
    x32 = x.astype(jnp.float32)
    mean = jnp.mean(x32, axis=(0, 2, 3), keepdims=True)
    var = jnp.mean((x32 - mean) ** 2, axis=(0, 2, 3), keepdims=True)
    ref = (x32 - mean) * jax.lax.rsqrt(var + EPS) * gamma.reshape(1, C, 1, 1) \
        + beta.reshape(1, C, 1, 1)
    assert jnp.allclose(out, ref, atol=1e-5, rtol=1e-5)

    print("KERNEL_OK")
</pallas_src>

<mosaic_0001>
module attributes {stable_mosaic.version = 11 : i64} {
  func.func @_bn_kernel(%arg0: memref<128x49xf32, #tpu.memory_space<vmem>>, %arg1: memref<128x1xf32, #tpu.memory_space<vmem>>, %arg2: memref<128x1xf32, #tpu.memory_space<vmem>>, %arg3: memref<128x49xf32, #tpu.memory_space<vmem>>) attributes {dimension_semantics = [], scalar_prefetch = 0 : i64, scratch_operands = 0 : i64, tpu.core_type = #tpu.core_type<tc>} {
    %c0 = arith.constant 0 : index
    %c0_0 = arith.constant 0 : index
    %0 = vector.load %arg0[%c0, %c0_0] : memref<128x49xf32, #tpu.memory_space<vmem>>, vector<128x49xf32>
    %cst = arith.constant dense<0.000000e+00> : vector<128xf32>
    %1 = vector.multi_reduction <add>, %0, %cst [1] : vector<128x49xf32> to vector<128xf32>
    %2 = vector.shape_cast %1 : vector<128xf32> to vector<128x1xf32>
    %cst_1 = arith.constant 4.900000e+01 : f32
    %3 = vector.broadcast %cst_1 : f32 to vector<128x1xf32>
    %4 = arith.divf %2, %3 : vector<128x1xf32>
    %5 = vector.broadcast %4 : vector<128x1xf32> to vector<128x49xf32>
    %6 = arith.subf %0, %5 : vector<128x49xf32>
    %7 = arith.mulf %6, %6 : vector<128x49xf32>
    %cst_2 = arith.constant dense<0.000000e+00> : vector<128xf32>
    %8 = vector.multi_reduction <add>, %7, %cst_2 [1] : vector<128x49xf32> to vector<128xf32>
    %9 = vector.shape_cast %8 : vector<128xf32> to vector<128x1xf32>
    %cst_3 = arith.constant 4.900000e+01 : f32
    %10 = vector.broadcast %cst_3 : f32 to vector<128x1xf32>
    %11 = arith.divf %9, %10 : vector<128x1xf32>
    %cst_4 = arith.constant 9.99999974E-6 : f32
    %12 = vector.broadcast %cst_4 : f32 to vector<128x1xf32>
    %13 = arith.addf %11, %12 : vector<128x1xf32>
    %14 = math.rsqrt %13 : vector<128x1xf32>
    %c0_5 = arith.constant 0 : index
    %c0_6 = arith.constant 0 : index
    %15 = vector.load %arg1[%c0_5, %c0_6] : memref<128x1xf32, #tpu.memory_space<vmem>>, vector<128x1xf32>
    %16 = arith.mulf %14, %15 : vector<128x1xf32>
    %c0_7 = arith.constant 0 : index
    %c0_8 = arith.constant 0 : index
    %17 = vector.load %arg2[%c0_7, %c0_8] : memref<128x1xf32, #tpu.memory_space<vmem>>, vector<128x1xf32>
    %18 = arith.mulf %4, %16 : vector<128x1xf32>
    %19 = arith.subf %17, %18 : vector<128x1xf32>
    %20 = vector.broadcast %16 : vector<128x1xf32> to vector<128x49xf32>
    %21 = arith.mulf %0, %20 : vector<128x49xf32>
    %22 = vector.broadcast %19 : vector<128x1xf32> to vector<128x49xf32>
    %23 = arith.addf %21, %22 : vector<128x49xf32>
    %c0_9 = arith.constant 0 : index
    %c0_10 = arith.constant 0 : index
    %24 = vector.load %arg3[%c0_9, %c0_10] : memref<128x49xf32, #tpu.memory_space<vmem>>, vector<128x49xf32>
    tpu.vector_store %arg3[%c0_9, %c0_10], %23 {strides = array<i32>} : memref<128x49xf32, #tpu.memory_space<vmem>>, vector<128x49xf32>,
    return
  }
}

</mosaic_0001>

<bundles_post_ra>
// kernel: tpu_custom_call.1
= control target key start
LH: loop header
LB: loop body
LE: loop exit
PB: predicated region body
PF: predicated region fallthrough
CT: control target
= control target key end

     0   :  { %vm30_vm0 = vcmask 400384   ;;  %s976_s0 = inlined_call_operand.vmem [shape: f32[128,49], index: 0, kind: input, shape index: {}]   ;;  %s977_s1 = inlined_call_operand.vmem [shape: f32[128,1], index: 1, kind: input, shape index: {}]   ;;  %s978_s2 = inlined_call_operand.vmem [shape: f32[128,1], index: 2, kind: input, shape index: {}]   ;;  %s979_s3 = inlined_call_operand.vmem [shape: f32[128,49], index: 3, kind: output, shape index: {}]  }
   0x1   :  { %v575_v0 = vld [vmem:[%s976_s0] sm:$0xff]  ;;  %v580_v1 = vld [vmem:[%s976_s0 + $0x10] sm:$0xff]  ;;  %v585_v2 = vld [vmem:[%s976_s0 + $0x8] sm:$0xff] }
   0x2   :  { %v31_v3 = vsel %vm30_vm0, %v575_v0, 0.0  ;;  %v37_v4 = vsel %vm30_vm0, %v580_v1, 0.0  ;;  %v594_v5 = vld [vmem:[%s976_s0 + $0x18] sm:$0xff]  ;;  %v34_v6 = vsel %vm30_vm0, %v585_v2, 0.0  ;;  %v603_v8 = vld [vmem:[%s976_s0 + $0x20] sm:$0xff]  ;;  %v608_v9 = vld [vmem:[%s976_s0 + $0x28] sm:$0xff] }
   0x3   :  { %32 = vadd.xlane.f32.xlu0 %v31_v3  ;;  %38 = vadd.xlane.f32.xlu1 %v37_v4  ;;  %v40_v7 = vsel %vm30_vm0, %v594_v5, 0.0  ;;  %v43_v10 = vsel %vm30_vm0, %v603_v8, 0.0  ;;  %v46_v11 = vsel %vm30_vm0, %v608_v9, 0.0  ;;  %v617_v12 = vld [vmem:[%s976_s0 + $0x30] sm:$0xff]  ;;  %v622_v13 = vld [vmem:[%s976_s0 + $0x38] sm:$0xff]  ;;  %v631_v16 = vld [vmem:[%s976_s0 + $0x40] sm:$0xff] }
   0x4   :  { %v49_v14 = vsel %vm30_vm0, %v617_v12, 0.0  ;;  %v52_v15 = vsel %vm30_vm0, %v622_v13, 0.0  ;;  %v636_v17 = vld [vmem:[%s976_s0 + $0x48] sm:$0xff]  ;;  %v55_v18 = vsel %vm30_vm0, %v631_v16, 0.0  ;;  %v645_v20 = vld [vmem:[%s976_s0 + $0x50] sm:$0xff]  ;;  %v650_v21 = vld [vmem:[%s976_s0 + $0x58] sm:$0xff] }
   0x5   :  { %v58_v19 = vsel %vm30_vm0, %v636_v17, 0.0  ;;  %v61_v22 = vsel %vm30_vm0, %v645_v20, 0.0  ;;  %v64_v23 = vsel %vm30_vm0, %v650_v21, 0.0  ;;  %v659_v24 = vld [vmem:[%s976_s0 + $0x60] sm:$0xff]  ;;  %v664_v25 = vld [vmem:[%s976_s0 + $0x68] sm:$0xff]  ;;  %v673_v28 = vld [vmem:[%s976_s0 + $0x70] sm:$0xff] }
   0x6   :  { %v67_v26 = vsel %vm30_vm0, %v659_v24, 0.0  ;;  %v70_v27 = vsel %vm30_vm0, %v664_v25, 0.0  ;;  %v678_v29 = vld [vmem:[%s976_s0 + $0x78] sm:$0xff]  ;;  %v73_v30 = vsel %vm30_vm0, %v673_v28, 0.0 }
   0x7   :  { %35 = vadd.xlane.f32.xlu0 %v34_v6  ;;  %41 = vadd.xlane.f32.xlu1 %v40_v7  ;;  %v76_v31 = vsel %vm30_vm0, %v678_v29, 0.0 }
   0xb   :  { %44 = vadd.xlane.f32.xlu0 %v43_v10  ;;  %47 = vadd.xlane.f32.xlu1 %v46_v11 }
   0xf   :  { %50 = vadd.xlane.f32.xlu0 %v49_v14  ;;  %53 = vadd.xlane.f32.xlu1 %v52_v15 }
  0x13   :  { %56 = vadd.xlane.f32.xlu0 %v55_v18  ;;  %59 = vadd.xlane.f32.xlu1 %v58_v19 }
  0x17   :  { %62 = vadd.xlane.f32.xlu0 %v61_v22  ;;  %65 = vadd.xlane.f32.xlu1 %v64_v23 }
  0x1b   :  { %68 = vadd.xlane.f32.xlu0 %v67_v26  ;;  %71 = vadd.xlane.f32.xlu1 %v70_v27 }
  0x1f   :  { %74 = vadd.xlane.f32.xlu0 %v73_v30  ;;  %77 = vadd.xlane.f32.xlu1 %v76_v31 }
  0x8c   :  { %v33_v32 = vpop.xlane.xlu0 %32  ;;  %v39_v33 = vpop.xlane.xlu1 %38 }
  0x8d   :  { %v684_v34 = vmul.f32 0.020408163, %v33_v32  ;;  %v686_v35 = vmul.f32 0.020408163, %v39_v33 }
  0x8f   :  { %v96_v36 = vsub.f32 %v575_v0, %v684_v34  ;;  %v98_v37 = vsub.f32 %v580_v1, %v686_v35 }
  0x90   :  { %v36_v38 = vpop.xlane.xlu0 %35  ;;  %v42_v39 = vpop.xlane.xlu1 %41 }
  0x91   :  { %v692_v40 = vmul.f32 0.020408163, %v36_v38  ;;  %v694_v41 = vmul.f32 0.020408163, %v42_v39  ;;  %v112_v42 = vmul.f32 %v96_v36, %v96_v36  ;;  %v114_v43 = vmul.f32 %v98_v37, %v98_v37 }
  0x93   :  { %v97_v44 = vsub.f32 %v585_v2, %v692_v40  ;;  %v99_v45 = vsub.f32 %v594_v5, %v694_v41  ;;  %v128_v46 = vsel %vm30_vm0, %v112_v42, 0.0  ;;  %v134_v49 = vsel %vm30_vm0, %v114_v43, 0.0 }
  0x94   :  { %129 = vadd.xlane.f32.xlu0 %v128_v46  ;;  %v45_v47 = vpop.xlane.xlu0 %44  ;;  %v48_v48 = vpop.xlane.xlu1 %47 }
  0x95   :  { %v702_v50 = vmul.f32 0.020408163, %v45_v47  ;;  %v704_v51 = vmul.f32 0.020408163, %v48_v48  ;;  %v113_v52 = vmul.f32 %v97_v44, %v97_v44  ;;  %v115_v53 = vmul.f32 %v99_v45, %v99_v45 }
  0x97   :  { %v100_v54 = vsub.f32 %v603_v8, %v702_v50  ;;  %v101_v55 = vsub.f32 %v608_v9, %v704_v51  ;;  %v131_v56 = vsel %vm30_vm0, %v113_v52, 0.0  ;;  %v137_v59 = vsel %vm30_vm0, %v115_v53, 0.0 }
  0x98   :  { %135 = vadd.xlane.f32.xlu0 %v134_v49  ;;  %132 = vadd.xlane.f32.xlu1 %v131_v56  ;;  %v51_v57 = vpop.xlane.xlu0 %50  ;;  %v54_v58 = vpop.xlane.xlu1 %53 }
  0x99   :  { %v712_v60 = vmul.f32 0.020408163, %v51_v57  ;;  %v714_v61 = vmul.f32 0.020408163, %v54_v58  ;;  %v116_v62 = vmul.f32 %v100_v54, %v100_v54  ;;  %v117_v63 = vmul.f32 %v101_v55, %v101_v55 }
  0x9b   :  { %v102_v3 = vsub.f32 %v617_v12, %v712_v60  ;;  %v103_v4 = vsub.f32 %v622_v13, %v714_v61  ;;  %v140_v6 = vsel %vm30_vm0, %v116_v62, 0.0  ;;  %v143_v11 = vsel %vm30_vm0, %v117_v63, 0.0 }
  0x9c   :  { %138 = vadd.xlane.f32.xlu1 %v137_v59  ;;  %141 = vadd.xlane.f32.xlu0 %v140_v6  ;;  %v57_v7 = vpop.xlane.xlu0 %56  ;;  %v60_v10 = vpop.xlane.xlu1 %59 }
  0x9d   :  { %v722_v14 = vmul.f32 0.020408163, %v57_v7  ;;  %v724_v15 = vmul.f32 0.020408163, %v60_v10  ;;  %v118_v18 = vmul.f32 %v102_v3, %v102_v3  ;;  %v119_v19 = vmul.f32 %v103_v4, %v103_v4 }
  0x9f   :  { %v104_v22 = vsub.f32 %v631_v16, %v722_v14  ;;  %v105_v23 = vsub.f32 %v636_v17, %v724_v15  ;;  %v146_v26 = vsel %vm30_vm0, %v118_v18, 0.0  ;;  %v149_v31 = vsel %vm30_vm0, %v119_v19, 0.0 }
  0xa0   :  { %144 = vadd.xlane.f32.xlu1 %v143_v11  ;;  %147 = vadd.xlane.f32.xlu0 %v146_v26  ;;  %v63_v27 = vpop.xlane.xlu0 %62  ;;  %v66_v30 = vpop.xlane.xlu1 %65 }
  0xa1   :  { %v732_v32 = vmul.f32 0.020408163, %v63_v27  ;;  %v734_v33 = vmul.f32 0.020408163, %v66_v30  ;;  %v120_v36 = vmul.f32 %v104_v22, %v104_v22  ;;  %v121_v37 = vmul.f32 %v105_v23, %v105_v23 }
  0xa2   :  { %v551_v22 = vmov 0  }
  0xa3   :  { %v106_v38 = vsub.f32 %v645_v20, %v732_v32  ;;  %v107_v39 = vsub.f32 %v650_v21, %v734_v33  ;;  %v152_v42 = vsel %vm30_vm0, %v120_v36, 0.0  ;;  %v155_v45 = vsel %vm30_vm0, %v121_v37, 0.0  ;;  %517 = vset.pattern.permute.xlu0 %v551_v22  ;;  %518 = vset.pattern.permute.xlu1 %v551_v22 }
  0xa4   :  { %150 = vadd.xlane.f32.xlu1 %v149_v31  ;;  %153 = vadd.xlane.f32.xlu0 %v152_v42  ;;  %v69_v43 = vpop.xlane.xlu0 %68  ;;  %v72_v44 = vpop.xlane.xlu1 %71 }
  0xa5   :  { %v742_v46 = vmul.f32 0.020408163, %v69_v43  ;;  %v744_v47 = vmul.f32 0.020408163, %v72_v44  ;;  %v122_v48 = vmul.f32 %v106_v38, %v106_v38  ;;  %v123_v49 = vmul.f32 %v107_v39, %v107_v39 }
  0xa7   :  { %v108_v52 = vsub.f32 %v659_v24, %v742_v46  ;;  %v109_v53 = vsub.f32 %v664_v25, %v744_v47  ;;  %v158_v54 = vsel %vm30_vm0, %v122_v48, 0.0  ;;  %v161_v57 = vsel %vm30_vm0, %v123_v49, 0.0 }
  0xa8   :  { %156 = vadd.xlane.f32.xlu1 %v155_v45  ;;  %159 = vadd.xlane.f32.xlu0 %v158_v54  ;;  %v75_v55 = vpop.xlane.xlu0 %74  ;;  %v78_v56 = vpop.xlane.xlu1 %77 }
  0xa9   :  { %v752_v58 = vmul.f32 0.020408163, %v75_v55  ;;  %v754_v59 = vmul.f32 0.020408163, %v78_v56  ;;  %v124_v62 = vmul.f32 %v108_v52, %v108_v52  ;;  %v125_v63 = vmul.f32 %v109_v53, %v109_v53  ;;  %v224_v56 = vld [vmem:[%s977_s1] sm:$0xff] }
  0xab   :  { %v110_v3 = vsub.f32 %v673_v28, %v752_v58  ;;  %v111_v4 = vsub.f32 %v678_v29, %v754_v59  ;;  %v164_v6 = vsel %vm30_vm0, %v124_v62, 0.0  ;;  %v167_v7 = vsel %vm30_vm0, %v125_v63, 0.0 }
  0xac   :  { %162 = vadd.xlane.f32.xlu1 %v161_v57  ;;  %165 = vadd.xlane.f32.xlu0 %v164_v6 }
  0xad   :  { %v126_v10 = vmul.f32 %v110_v3, %v110_v3  ;;  %v127_v11 = vmul.f32 %v111_v4, %v111_v4 }
  0xaf   :  { %v170_v18 = vsel %vm30_vm0, %v126_v10, 0.0  ;;  %v173_v19 = vsel %vm30_vm0, %v127_v11, 0.0 }
  0xb0   :  { %168 = vadd.xlane.f32.xlu1 %v167_v7  ;;  %171 = vadd.xlane.f32.xlu0 %v170_v18  ;;  %v225_v7 = vld [vmem:[%s977_s1 + $0x8] sm:$0xff] }
  0xb4   :  { %174 = vadd.xlane.f32.xlu1 %v173_v19 }
 0x11d   :  { %v130_v23 = vpop.xlane.xlu0 %129 }
 0x11e   :  { %v176_v26 = vmul.f32 0.020408163, %v130_v23 }
 0x120   :  { %v192_v27 = vadd.f32 1e-05, %v176_v26 }
 0x121   :  { %v133_v30 = vpop.xlane.xlu1 %132  ;;  %v136_v31 = vpop.xlane.xlu0 %135 }
 0x122   :  { %519 = vrsqrt.f32 %v192_v27  ;;  %v177_v36 = vmul.f32 0.020408163, %v133_v30  ;;  %v178_v37 = vmul.f32 0.020408163, %v136_v31  ;;  %v226_v31 = vld [vmem:[%s977_s1 + $0x10] sm:$0xff] }
 0x124   :  { %v193_v38 = vadd.f32 1e-05, %v177_v36  ;;  %v194_v39 = vadd.f32 1e-05, %v178_v37 }
 0x125   :  { %v139_v42 = vpop.xlane.xlu1 %138  ;;  %v142_v43 = vpop.xlane.xlu0 %141 }
 0x126   :  { %521 = vrsqrt.f32 %v193_v38  ;;  %v179_v44 = vmul.f32 0.020408163, %v139_v42  ;;  %v180_v48 = vmul.f32 0.020408163, %v142_v43 }
 0x127   :  { %523 = vrsqrt.f32 %v194_v39 }
 0x128   :  { %v195_v45 = vadd.f32 1e-05, %v179_v44  ;;  %v196_v53 = vadd.f32 1e-05, %v180_v48 }
 0x129   :  { %v145_v49 = vpop.xlane.xlu1 %144  ;;  %v148_v52 = vpop.xlane.xlu0 %147 }
 0x12a   :  { %525 = vrsqrt.f32 %v195_v45  ;;  %v181_v54 = vmul.f32 0.020408163, %v145_v49  ;;  %v182_v62 = vmul.f32 0.020408163, %v148_v52  ;;  %v227_v45 = vld [vmem:[%s977_s1 + $0x18] sm:$0xff] }
 0x12b   :  { %527 = vrsqrt.f32 %v196_v53 }
 0x12c   :  { %v197_v3 = vadd.f32 1e-05, %v181_v54  ;;  %v198_v18 = vadd.f32 1e-05, %v182_v62  ;;  %v228_v62 = vld [vmem:[%s977_s1 + $0x20] sm:$0xff] }
 0x12d   :  { %v151_v55 = vpop.xlane.xlu1 %150  ;;  %v154_v63 = vpop.xlane.xlu0 %153 }
 0x12e   :  { %529 = vrsqrt.f32 %v197_v3  ;;  %v183_v19 = vmul.f32 0.020408163, %v151_v55  ;;  %v184_v37 = vmul.f32 0.020408163, %v154_v63 }
 0x12f   :  { %v520_v57 = vpop.eup %519 }
 0x130   :  { %v767_v4 = vmul.f32 %v520_v57, %v224_v56  ;;  %v199_v38 = vadd.f32 1e-05, %v183_v19  ;;  %v200_v53 = vadd.f32 1e-05, %v184_v37  ;;  %v233_v19 = vld [vmem:[%s977_s1 + $0x48] sm:$0xff] }
 0x131   :  { %v157_v6 = vpop.xlane.xlu1 %156  ;;  %v160_v27 = vpop.xlane.xlu0 %159 }
 0x132   :  { %v185_v10 = vmul.f32 0.020408163, %v157_v6  ;;  %306 = vperm.xlu0 %517, %v767_v4   ;;  %v186_v49 = vmul.f32 0.020408163, %v160_v27 }
 0x133   :  { %v522_v11 = vpop.eup %521 }
 0x134   :  { %v201_v22 = vadd.f32 1e-05, %v185_v10  ;;  %v773_v23 = vmul.f32 %v522_v11, %v225_v7  ;;  %v524_v26 = vpop.eup %523  ;;  %v202_v3 = vadd.f32 1e-05, %v186_v49 }
 0x135   :  { %v163_v30 = vpop.xlane.xlu1 %162  ;;  %v779_v42 = vmul.f32 %v524_v26, %v226_v31  ;;  %v166_v52 = vpop.xlane.xlu0 %165 }
 0x136   :  { %531 = vrsqrt.f32 %v201_v22  ;;  %v187_v36 = vmul.f32 0.020408163, %v163_v30  ;;  %311 = vperm.xlu1 %518, %v773_v23   ;;  %v188_v6 = vmul.f32 0.020408163, %v166_v52  ;;  %v229_v22 = vld [vmem:[%s977_s1 + $0x28] sm:$0xff] }
 0x137   :  { %533 = vrsqrt.f32 %v198_v18  ;;  %v526_v43 = vpop.eup %525  ;;  %v237_v52 = vld [vmem:[%s977_s1 + $0x68] sm:$0xff] }
 0x138   :  { %v203_v39 = vadd.f32 1e-05, %v187_v36  ;;  %v243_v55 = vmul.f32 %v526_v43, %v227_v45  ;;  %v528_v56 = vpop.eup %527  ;;  %v204_v27 = vadd.f32 1e-05, %v188_v6 }
 0x139   :  { %v169_v44 = vpop.xlane.xlu1 %168  ;;  %v788_v10 = vmul.f32 %v528_v56, %v228_v62  ;;  %v172_v18 = vpop.xlane.xlu0 %171 }
 0x13a   :  { %535 = vrsqrt.f32 %v203_v39  ;;  %v189_v48 = vmul.f32 0.020408163, %v169_v44  ;;  %316 = vperm.xlu1 %518, %v779_v42   ;;  %v190_v30 = vmul.f32 0.020408163, %v172_v18  ;;  %v230_v39 = vld [vmem:[%s977_s1 + $0x30] sm:$0xff] }
 0x13b   :  { %537 = vrsqrt.f32 %v199_v38  ;;  %v530_v11 = vpop.eup %529  ;;  %v235_v38 = vld [vmem:[%s977_s1 + $0x58] sm:$0xff] }
 0x13c   :  { %v205_v54 = vadd.f32 1e-05, %v189_v48  ;;  %v245_v36 = vmul.f32 %v530_v11, %v229_v22  ;;  %v206_v44 = vadd.f32 1e-05, %v190_v30  ;;  %v257_v22 = vld [vmem:[%s978_s2 + $0x8] sm:$0xff] }
 0x13d   :  { %v175_v57 = vpop.xlane.xlu1 %174 }
 0x13e   :  { %539 = vrsqrt.f32 %v205_v54  ;;  %v191_v63 = vmul.f32 0.020408163, %v175_v57  ;;  %321 = vperm.xlu1 %518, %v243_v55  }
 0x13f   :  { %541 = vrsqrt.f32 %v200_v53  ;;  %v231_v53 = vld [vmem:[%s977_s1 + $0x38] sm:$0xff] }
 0x140   :  { %v207_v7 = vadd.f32 1e-05, %v191_v63  ;;  %v239_v63 = vld [vmem:[%s977_s1 + $0x78] sm:$0xff] }
 0x142   :  { %543 = vrsqrt.f32 %v207_v7  ;;  %326 = vperm.xlu1 %518, %v788_v10  }
 0x143   :  { %v532_v26 = vpop.eup %531  ;;  %545 = vrsqrt.f32 %v202_v3  ;;  %v232_v3 = vld [vmem:[%s977_s1 + $0x40] sm:$0xff] }
 0x144   :  { %v249_v31 = vmul.f32 %v532_v26, %v233_v19  ;;  %v534_v37 = vpop.eup %533  ;;  %547 = vrsqrt.f32 %v204_v27  ;;  %v273_v19 = vmul.f32 %v773_v23, %v692_v40  ;;  %v234_v26 = vld [vmem:[%s977_s1 + $0x50] sm:$0xff]  ;;  %v236_v40 = vld [vmem:[%s977_s1 + $0x60] sm:$0xff] }
 0x145   :  { %v803_v48 = vmul.f32 %v534_v37, %v230_v39  ;;  %549 = vrsqrt.f32 %v206_v44  ;;  %v275_v37 = vmul.f32 %v243_v55, %v694_v41  ;;  %v259_v39 = vld [vmem:[%s978_s2 + $0x18] sm:$0xff]  ;;  %v277_v44 = vmul.f32 %v245_v36, %v704_v51  ;;  %v261_v41 = vld [vmem:[%s978_s2 + $0x28] sm:$0xff]  ;;  %v238_v55 = vld [vmem:[%s977_s1 + $0x70] sm:$0xff] }
 0x146   :  { %351 = vperm.xlu0 %517, %v249_v31   ;;  %331 = vperm.xlu1 %518, %v245_v36   ;;  %v289_v27 = vsub.f32 %v257_v22, %v273_v19  ;;  %v263_v51 = vld [vmem:[%s978_s2 + $0x38] sm:$0xff]  ;;  %v256_v36 = vld [vmem:[%s978_s2] sm:$0xff] }
 0x147   :  { %v536_v43 = vpop.eup %535  ;;  %v291_v23 = vsub.f32 %v259_v39, %v275_v37 }
 0x148   :  { %v251_v45 = vmul.f32 %v536_v43, %v235_v38  ;;  %v538_v49 = vpop.eup %537 }
 0x149   :  { %v247_v57 = vmul.f32 %v538_v49, %v231_v53 }
 0x14a   :  { %361 = vperm.xlu0 %517, %v251_v45   ;;  %336 = vperm.xlu1 %518, %v803_v48   ;;  %v283_v19 = vmul.f32 %v251_v45, %v734_v33  ;;  %v278_v33 = vmul.f32 %v803_v48, %v712_v60  ;;  %v271_v60 = vld [vmem:[%s978_s2 + $0x78] sm:$0xff] }
 0x14b   :  { %v540_v54 = vpop.eup %539 }
 0x14c   :  { %v253_v56 = vmul.f32 %v540_v54, %v237_v52  ;;  %v542_v62 = vpop.eup %541  ;;  %v293_v52 = vsub.f32 %v261_v41, %v277_v44  ;;  %v279_v54 = vmul.f32 %v247_v57, %v714_v61  ;;  %v274_v61 = vmul.f32 %v779_v42, %v686_v35  ;;  %v267_v35 = vld [vmem:[%s978_s2 + $0x58] sm:$0xff]  ;;  %v260_v42 = vld [vmem:[%s978_s2 + $0x20] sm:$0xff] }
 0x14d   :  { %v248_v18 = vmul.f32 %v542_v62, %v232_v3  ;;  %v272_v62 = vmul.f32 %v767_v4, %v684_v34  ;;  %v265_v34 = vld [vmem:[%s978_s2 + $0x48] sm:$0xff]  ;;  %v258_v4 = vld [vmem:[%s978_s2 + $0x10] sm:$0xff] }
 0x14e   :  { %371 = vperm.xlu0 %517, %v253_v56   ;;  %341 = vperm.xlu1 %518, %v247_v57  }
 0x14f   :  { %v544_v6 = vpop.eup %543  ;;  %v288_v3 = vsub.f32 %v256_v36, %v272_v62 }
 0x150   :  { %v546_v7 = vpop.eup %545  ;;  %v255_v11 = vmul.f32 %v544_v6, %v239_v63  ;;  %v295_v63 = vsub.f32 %v263_v51, %v279_v54  ;;  %v281_v6 = vmul.f32 %v249_v31, %v724_v15  ;;  %v276_v15 = vmul.f32 %v788_v10, %v702_v50  ;;  %v269_v50 = vld [vmem:[%s978_s2 + $0x68] sm:$0xff]  ;;  %v262_v10 = vld [vmem:[%s978_s2 + $0x30] sm:$0xff] }
 0x151   :  { %v250_v30 = vmul.f32 %v546_v7, %v234_v26  ;;  %v548_v38 = vpop.eup %547  ;;  %v290_v7 = vsub.f32 %v258_v4, %v274_v61  ;;  %v299_v31 = vsub.f32 %v267_v35, %v283_v19  ;;  %v285_v26 = vmul.f32 %v253_v56, %v744_v47  ;;  %v264_v47 = vld [vmem:[%s978_s2 + $0x40] sm:$0xff] }
 0x152   :  { %381 = vperm.xlu0 %517, %v255_v11   ;;  %346 = vperm.xlu1 %518, %v248_v18   ;;  %v252_v43 = vmul.f32 %v548_v38, %v236_v40  ;;  %v550_v49 = vpop.eup %549  ;;  %v297_v57 = vsub.f32 %v265_v34, %v281_v6  ;;  %v292_v22 = vsub.f32 %v260_v42, %v276_v15 }
 0x153   :  { %v254_v53 = vmul.f32 %v550_v49, %v238_v55  ;;  %v301_v45 = vsub.f32 %v269_v50, %v285_v26  ;;  %v287_v37 = vmul.f32 %v255_v11, %v754_v59  ;;  %v280_v38 = vmul.f32 %v248_v18, %v722_v14  ;;  %v266_v59 = vld [vmem:[%s978_s2 + $0x50] sm:$0xff]  ;;  %v268_v18 = vld [vmem:[%s978_s2 + $0x60] sm:$0xff] }
 0x154   :  { %v282_v39 = vmul.f32 %v250_v30, %v732_v32  ;;  %v284_v11 = vmul.f32 %v252_v43, %v742_v46  ;;  %v270_v32 = vld [vmem:[%s978_s2 + $0x70] sm:$0xff] }
 0x155   :  { %v303_v48 = vsub.f32 %v271_v60, %v287_v37  ;;  %v296_v56 = vsub.f32 %v264_v47, %v280_v38 }
 0x156   :  { %407 = vperm.xlu0 %517, %v289_v27   ;;  %356 = vperm.xlu1 %518, %v250_v30   ;;  %v294_v27 = vsub.f32 %v262_v10, %v278_v33  ;;  %v298_v14 = vsub.f32 %v266_v59, %v282_v39  ;;  %v300_v40 = vsub.f32 %v268_v18, %v284_v11 }
 0x15a   :  { %417 = vperm.xlu0 %517, %v291_v23   ;;  %366 = vperm.xlu1 %518, %v252_v43   ;;  %v286_v23 = vmul.f32 %v254_v53, %v752_v58 }
 0x15c   :  { %v302_v30 = vsub.f32 %v270_v32, %v286_v23 }
 0x15e   :  { %427 = vperm.xlu0 %517, %v293_v52   ;;  %376 = vperm.xlu1 %518, %v254_v53  }
 0x162   :  { %437 = vperm.xlu0 %517, %v295_v63   ;;  %402 = vperm.xlu1 %518, %v288_v3  }
 0x166   :  { %447 = vperm.xlu0 %517, %v297_v57   ;;  %412 = vperm.xlu1 %518, %v290_v7  }
 0x16a   :  { %457 = vperm.xlu0 %517, %v299_v31   ;;  %422 = vperm.xlu1 %518, %v292_v22  }
 0x16e   :  { %467 = vperm.xlu0 %517, %v301_v45   ;;  %432 = vperm.xlu1 %518, %v294_v27  }
 0x172   :  { %477 = vperm.xlu0 %517, %v303_v48   ;;  %442 = vperm.xlu1 %518, %v296_v56  }
 0x176   :  { %452 = vperm.xlu1 %518, %v298_v14  }
 0x17a   :  { %462 = vperm.xlu1 %518, %v300_v40  }
 0x17e   :  { %472 = vperm.xlu1 %518, %v302_v30  }
 0x1ad   :  { %v307_v55 = vpop.permute.xlu0 %306 }
 0x1b1   :  { %v312_v44 = vpop.permute.xlu1 %311 }
 0x1b2   :  { %v385_v53 = vmul.f32 %v312_v44, %v585_v2 }
 0x1b5   :  { %v317_v49 = vpop.permute.xlu1 %316 }
 0x1b6   :  { %v386_v33 = vmul.f32 %v317_v49, %v580_v1 }
 0x1b9   :  { %v322_v41 = vpop.permute.xlu1 %321 }
 0x1ba   :  { %v387_v34 = vmul.f32 %v322_v41, %v594_v5  ;;  %v384_v5 = vmul.f32 %v307_v55, %v575_v0 }
 0x1bd   :  { %v327_v46 = vpop.permute.xlu1 %326 }
 0x1be   :  { %v388_v27 = vmul.f32 %v327_v46, %v603_v8 }
 0x1c1   :  { %v332_v43 = vpop.permute.xlu1 %331  ;;  %v352_v52 = vpop.permute.xlu0 %351 }
 0x1c2   :  { %v389_v19 = vmul.f32 %v332_v43, %v608_v9  ;;  %v393_v50 = vmul.f32 %v352_v52, %v636_v17 }
 0x1c5   :  { %v337_v54 = vpop.permute.xlu1 %336  ;;  %v362_v62 = vpop.permute.xlu0 %361 }
 0x1c6   :  { %v395_v1 = vmul.f32 %v362_v62, %v650_v21  ;;  %v390_v47 = vmul.f32 %v337_v54, %v617_v12 }
 0x1c9   :  { %v342_v51 = vpop.permute.xlu1 %341  ;;  %v372_v36 = vpop.permute.xlu0 %371 }
 0x1ca   :  { %v391_v42 = vmul.f32 %v342_v51, %v622_v13  ;;  %v397_v8 = vmul.f32 %v372_v36, %v664_v25 }
 0x1cd   :  { %v347_v63 = vpop.permute.xlu1 %346  ;;  %v382_v58 = vpop.permute.xlu0 %381 }
 0x1ce   :  { %v392_v59 = vmul.f32 %v347_v63, %v631_v16  ;;  %v399_v12 = vmul.f32 %v382_v58, %v678_v29 }
 0x1d1   :  { %v357_v3 = vpop.permute.xlu1 %356  ;;  %v408_v6 = vpop.permute.xlu0 %407 }
 0x1d2   :  { %v481_v61 = vadd.f32 %v408_v6, %v385_v53  ;;  %v394_v40 = vmul.f32 %v357_v3, %v645_v20 }
 0x1d4   :  { %497 = vst.msk [vmem:[%s979_s3 + $0x8] sm:$0xff] %vm30_vm0, %v481_v61 }
 0x1d5   :  { %v367_v4 = vpop.permute.xlu1 %366  ;;  %v418_v57 = vpop.permute.xlu0 %417 }
 0x1d6   :  { %v483_v7 = vadd.f32 %v418_v57, %v387_v34  ;;  %v396_v23 = vmul.f32 %v367_v4, %v659_v24 }
 0x1d8   :  { %499 = vst.msk [vmem:[%s979_s3 + $0x18] sm:$0xff] %vm30_vm0, %v483_v7 }
 0x1d9   :  { %v377_v2 = vpop.permute.xlu1 %376  ;;  %v428_v15 = vpop.permute.xlu0 %427 }
 0x1da   :  { %v485_v35 = vadd.f32 %v428_v15, %v389_v19  ;;  %v398_v30 = vmul.f32 %v377_v2, %v673_v28 }
 0x1dc   :  { %501 = vst.msk [vmem:[%s979_s3 + $0x28] sm:$0xff] %vm30_vm0, %v485_v35 }
 0x1dd   :  { %v403_v31 = vpop.permute.xlu1 %402  ;;  %v438_v22 = vpop.permute.xlu0 %437 }
 0x1de   :  { %v480_v9 = vadd.f32 %v403_v31, %v384_v5  ;;  %v487_v26 = vadd.f32 %v438_v22, %v391_v42 }
 0x1e0   :  { %496 = vst.msk [vmem:[%s979_s3] sm:$0xff] %vm30_vm0, %v480_v9  ;;  %503 = vst.msk [vmem:[%s979_s3 + $0x38] sm:$0xff] %vm30_vm0, %v487_v26 }
 0x1e1   :  { %v413_v0 = vpop.permute.xlu1 %412  ;;  %v448_v13 = vpop.permute.xlu0 %447 }
 0x1e2   :  { %v482_v10 = vadd.f32 %v413_v0, %v386_v33  ;;  %v489_v45 = vadd.f32 %v448_v13, %v393_v50 }
 0x1e4   :  { %498 = vst.msk [vmem:[%s979_s3 + $0x10] sm:$0xff] %vm30_vm0, %v482_v10  ;;  %505 = vst.msk [vmem:[%s979_s3 + $0x48] sm:$0xff] %vm30_vm0, %v489_v45 }
 0x1e5   :  { %v423_v17 = vpop.permute.xlu1 %422  ;;  %v458_v37 = vpop.permute.xlu0 %457 }
 0x1e6   :  { %v484_v38 = vadd.f32 %v423_v17, %v388_v27  ;;  %v491_v60 = vadd.f32 %v458_v37, %v395_v1 }
 0x1e8   :  { %500 = vst.msk [vmem:[%s979_s3 + $0x20] sm:$0xff] %vm30_vm0, %v484_v38  ;;  %507 = vst.msk [vmem:[%s979_s3 + $0x58] sm:$0xff] %vm30_vm0, %v491_v60 }
 0x1e9   :  { %v433_v21 = vpop.permute.xlu1 %432  ;;  %v468_v48 = vpop.permute.xlu0 %467 }
 0x1ea   :  { %v486_v56 = vadd.f32 %v433_v21, %v390_v47  ;;  %v493_v39 = vadd.f32 %v468_v48, %v397_v8 }
 0x1ec   :  { %502 = vst.msk [vmem:[%s979_s3 + $0x30] sm:$0xff] %vm30_vm0, %v486_v56  ;;  %509 = vst.msk [vmem:[%s979_s3 + $0x68] sm:$0xff] %vm30_vm0, %v493_v39 }
 0x1ed   :  { %v443_v25 = vpop.permute.xlu1 %442  ;;  %v478_v14 = vpop.permute.xlu0 %477 }
 0x1ee   :  { %v488_v11 = vadd.f32 %v443_v25, %v392_v59  ;;  %v495_v18 = vadd.f32 %v478_v14, %v399_v12 }
 0x1f0   :  { %504 = vst.msk [vmem:[%s979_s3 + $0x40] sm:$0xff] %vm30_vm0, %v488_v11  ;;  %511 = vst.msk [vmem:[%s979_s3 + $0x78] sm:$0xff] %vm30_vm0, %v495_v18 }
 0x1f1   :  { %v453_v16 = vpop.permute.xlu1 %452 }
 0x1f2   :  { %v490_v29 = vadd.f32 %v453_v16, %v394_v40 }
 0x1f4   :  { %506 = vst.msk [vmem:[%s979_s3 + $0x50] sm:$0xff] %vm30_vm0, %v490_v29 }
 0x1f5   :  { %v463_v20 = vpop.permute.xlu1 %462 }
 0x1f6   :  { %v492_v32 = vadd.f32 %v463_v20, %v396_v23 }
 0x1f8   :  { %508 = vst.msk [vmem:[%s979_s3 + $0x60] sm:$0xff] %vm30_vm0, %v492_v32 }
 0x1f9   :  { %v473_v44 = vpop.permute.xlu1 %472 }
 0x1fa   :  { %v494_v49 = vadd.f32 %v473_v44, %v398_v30 }
 0x1fc   :  { %510 = vst.msk [vmem:[%s979_s3 + $0x70] sm:$0xff] %vm30_vm0, %v494_v49 }

</bundles_post_ra>
